<compile_context>
chip_gen: v6e
topology: v6e:2x2x1
jax: 0.10.0
libtpu: 0.0.40
codegen_flags: <defaults>
</compile_context>

<pallas_src>
import jax
import jax.numpy as jnp
from jax.experimental import pallas as pl
from jax.experimental.pallas import tpu as pltpu

INPUT_DIM = 8
HIDDEN = 128
OUTPUT_DIM = 5
OUT_PAD = 8                # padded output lane width (block uses full-last-dim exemption)
DEEP_BRANCHES = (1, 2, 4)  # branches that have the 128x128 middle layer
MAX_TILE = 1024            # rows per grid step at large batch

# Static kernel "plan": tuples of (h1_lane_offset, width, mid_slot_offset_or_None).
# 128-plan: one 128x128 middle matmul per deep branch (best for 128-wide MXUs, v5e).
# 256-plan: deep branches 1 and 2 fused into one block-diagonal 256x256 middle
#           matmul (fills the 256-wide MXUs of v6e / v7x).
PLAN_128 = ((0, 128, None), (128, 128, 0), (256, 128, 128), (384, 128, None), (512, 128, 256))
PLAN_256 = ((0, 128, None), (128, 256, 0), (384, 128, None), (512, 128, 256))


def _make_kernel(plan):
    def kernel(x_ref, w1_ref, b1_ref, w2_ref, b2_ref, w3_ref, b3_ref, o_ref):
        xb = x_ref[...].astype(jnp.bfloat16)                                   # (TB, 8)
        # Fused first layer of all five branches: (TB,8)@(8,640) bf16 matmul.
        h1 = jnp.dot(xb, w1_ref[...], preferred_element_type=jnp.float32)
        h1 = jnp.maximum(h1 + b1_ref[...], 0.0)                                # (TB, 640) f32

        # Head accumulated piece by piece -> no (TB,640) concat temp.
        acc = jnp.zeros((xb.shape[0], OUT_PAD), jnp.float32)
        for off, width, mid in plan:                                           # static unroll
            h = h1[:, off:off + width].astype(jnp.bfloat16)
            if mid is not None:                                                # deep branch(es)
                z = jnp.dot(h, w2_ref[mid:mid + width, mid:mid + width],
                            preferred_element_type=jnp.float32)
                h = jnp.maximum(z + b2_ref[:, mid:mid + width], 0.0).astype(jnp.bfloat16)
            acc = acc + jnp.dot(h, w3_ref[off:off + width, :],
                                preferred_element_type=jnp.float32)
        o_ref[...] = (acc + b3_ref[...]).astype(o_ref.dtype)                   # (TB, 8) store
    return kernel


def _round_up(n, m):
    return -(-n // m) * m


def _choose_tile(b):
    """Rows per grid step (multiple of 8)."""
    b8 = max(8, _round_up(b, 8))
    if b8 <= 2 * MAX_TILE:
        if b8 >= 128:
            # Split into exactly two tiles so v7x's two TensorCores both get work.
            return _round_up((b8 + 1) // 2, 8)
        return b8                              # tiny batch: single step
    return MAX_TILE


def _default_plan():
    try:
        kind = jax.devices()[0].device_kind.lower()
    except Exception:
        kind = ""
    # 256-wide MXU generations benefit from the fused 256x256 middle matmul.
    if ("v6" in kind) or ("v7" in kind) or ("7x" in kind):
        return PLAN_256
    return PLAN_128


def regnet_forward(x, packed, plan=None):
    if plan is None:
        plan = _default_plan()
    w1, b1, w2, b2, w3, b3 = packed
    B = x.shape[0]
    tb = _choose_tile(B)
    b_pad = _round_up(max(B, tb), tb)
    if b_pad != B:
        x = jnp.pad(x, ((0, b_pad - B), (0, 0)))

    def resident(arr):
        nd = arr.ndim
        return pl.BlockSpec(arr.shape, lambda i, _nd=nd: (0,) * _nd)

    out = pl.pallas_call(
        _make_kernel(tuple(plan)),
        out_shape=jax.ShapeDtypeStruct((b_pad, OUT_PAD), jnp.float32),
        grid=(b_pad // tb,),
        in_specs=[
            pl.BlockSpec((tb, INPUT_DIM), lambda i: (i, 0)),   # x: tiled over batch
            resident(w1), resident(b1),
            resident(w2), resident(b2),
            resident(w3), resident(b3),
        ],
        out_specs=pl.BlockSpec((tb, OUT_PAD), lambda i: (i, 0)),
        compiler_params=pltpu.CompilerParams(
            dimension_semantics=("parallel",),
            vmem_limit_bytes=32 * 1024 * 1024,
        ),
    )(x, w1, b1, w2, b2, w3, b3)
    return out[:B, :OUTPUT_DIM]


def init_params(key):
    """Per-branch weights with nn.Linear-style uniform init (stored as (in, out))."""
    branches = []
    keys = jax.random.split(key, OUTPUT_DIM)
    lim_in = 1.0 / float(INPUT_DIM) ** 0.5
    lim_h = 1.0 / float(HIDDEN) ** 0.5
    for idx in range(OUTPUT_DIM):
        ks = jax.random.split(keys[idx], 6)
        w1 = jax.random.uniform(ks[0], (INPUT_DIM, HIDDEN), jnp.float32, -lim_in, lim_in)
        b1 = jax.random.uniform(ks[1], (HIDDEN,), jnp.float32, -lim_in, lim_in)
        if idx in DEEP_BRANCHES:
            w2 = jax.random.uniform(ks[2], (HIDDEN, HIDDEN), jnp.float32, -lim_h, lim_h)
            b2 = jax.random.uniform(ks[3], (HIDDEN,), jnp.float32, -lim_h, lim_h)
        else:
            w2, b2 = None, None
        w3 = jax.random.uniform(ks[4], (HIDDEN, 1), jnp.float32, -lim_h, lim_h)
        b3 = jax.random.uniform(ks[5], (1,), jnp.float32, -lim_h, lim_h)
        branches.append((w1, b1, w2, b2, w3, b3))
    return branches


def pack_params(branches):
    """Pack per-branch weights into the fused layouts the kernel consumes.

    Layout is shared by both plans: h1 lanes [b*128:(b+1)*128] = branch b;
    deep-branch middle weights live block-diagonally in a (384,384) matrix at
    slots 0/128/256 (branches 1/2/4); the heads live column-wise in (640, 8).
    """
    w1 = jnp.concatenate([b[0] for b in branches], axis=1)                       # (8, 640)
    b1 = jnp.concatenate([b[1].reshape(1, HIDDEN) for b in branches], axis=1)    # (1, 640)
    w2 = jnp.zeros((3 * HIDDEN, 3 * HIDDEN), jnp.float32)                        # (384, 384)
    b2 = jnp.zeros((1, 3 * HIDDEN), jnp.float32)
    for slot, bi in enumerate(DEEP_BRANCHES):
        r = slot * HIDDEN
        w2 = w2.at[r:r + HIDDEN, r:r + HIDDEN].set(branches[bi][2])
        b2 = b2.at[0, r:r + HIDDEN].set(branches[bi][3])
    w3 = jnp.zeros((OUTPUT_DIM * HIDDEN, OUT_PAD), jnp.float32)                  # (640, 8)
    b3 = jnp.zeros((1, OUT_PAD), jnp.float32)
    for bi, br in enumerate(branches):
        w3 = w3.at[bi * HIDDEN:(bi + 1) * HIDDEN, bi].set(br[4][:, 0])
        b3 = b3.at[0, bi].set(br[5][0])
    return (w1.astype(jnp.bfloat16), b1,
            w2.astype(jnp.bfloat16), b2,
            w3.astype(jnp.bfloat16), b3)


def regnet_ref(x, branches):
    """Pure-JAX f32 reference mirroring the PyTorch forward."""
    cols = []
    for (w1, b1, w2, b2, w3, b3) in branches:
        h = jnp.maximum(x @ w1 + b1, 0.0)
        if w2 is not None:
            h = jnp.maximum(h @ w2 + b2, 0.0)
        cols.append(h @ w3 + b3)
    return jnp.concatenate(cols, axis=1)


if __name__ == "__main__":
    key = jax.random.PRNGKey(0)
    k_x, k_p, k_x2 = jax.random.split(key, 3)

    branches = init_params(k_p)
    packed = pack_params(branches)

    # bf16 matmuls with f32 accumulation -> looser tolerance than pure f32.
    ATOL = 4e-2
    RTOL = 4e-2

    # Small batch: single grid step, whole batch per invocation, default plan.
    B = 8
    x = jax.random.normal(k_x, (B, INPUT_DIM), dtype=jnp.float32)
    out = jax.block_until_ready(regnet_forward(x, packed))
    ref = regnet_ref(x, branches)
    assert out.shape == (B, OUTPUT_DIM), out.shape
    assert jnp.allclose(out, ref, atol=ATOL, rtol=RTOL)

    # Larger batch: two grid steps (one per v7x TensorCore), batch padding,
    # and both MXU-packing plans validated regardless of the local chip.
    B2 = 300
    x2 = jax.random.normal(k_x2, (B2, INPUT_DIM), dtype=jnp.float32)
    ref2 = regnet_ref(x2, branches)
    for plan in (PLAN_128, PLAN_256):
        out2 = jax.block_until_ready(regnet_forward(x2, packed, plan=plan))
        assert out2.shape == (B2, OUTPUT_DIM), out2.shape
        assert jnp.allclose(out2, ref2, atol=ATOL, rtol=RTOL)

    print("KERNEL_OK")
</pallas_src>

<mosaic_0001>
module attributes {stable_mosaic.version = 11 : i64} {
  func.func @kernel(%arg0: i32, %arg1: memref<8x8xf32, #tpu.memory_space<vmem>>, %arg2: memref<8x640xbf16, #tpu.memory_space<vmem>>, %arg3: memref<1x640xf32, #tpu.memory_space<vmem>>, %arg4: memref<384x384xbf16, #tpu.memory_space<vmem>>, %arg5: memref<1x384xf32, #tpu.memory_space<vmem>>, %arg6: memref<640x8xbf16, #tpu.memory_space<vmem>>, %arg7: memref<1x8xf32, #tpu.memory_space<vmem>>, %arg8: memref<8x8xf32, #tpu.memory_space<vmem>>) attributes {dimension_semantics = [#tpu.dimension_semantics<parallel>], iteration_bounds = array<i64: 1>, scalar_prefetch = 0 : i64, scratch_operands = 0 : i64, tpu.core_type = #tpu.core_type<tc>, window_params = [{transform_indices = @transform_0, window_bounds = array<i64: 8, 8>}, {pipeline_mode = #tpu.pipeline_mode<synchronous>, transform_indices = @transform_1, window_bounds = array<i64: 8, 640>}, {pipeline_mode = #tpu.pipeline_mode<synchronous>, transform_indices = @transform_2, window_bounds = array<i64: 1, 640>}, {pipeline_mode = #tpu.pipeline_mode<synchronous>, transform_indices = @transform_3, window_bounds = array<i64: 384, 384>}, {pipeline_mode = #tpu.pipeline_mode<synchronous>, transform_indices = @transform_4, window_bounds = array<i64: 1, 384>}, {pipeline_mode = #tpu.pipeline_mode<synchronous>, transform_indices = @transform_5, window_bounds = array<i64: 640, 8>}, {pipeline_mode = #tpu.pipeline_mode<synchronous>, transform_indices = @transform_6, window_bounds = array<i64: 1, 8>}, {transform_indices = @transform_7, window_bounds = array<i64: 8, 8>}]} {
    %c0 = arith.constant 0 : index
    %c0_0 = arith.constant 0 : index
    %0 = vector.load %arg1[%c0, %c0_0] : memref<8x8xf32, #tpu.memory_space<vmem>>, vector<8x8xf32>
    %1 = arith.truncf %0 : vector<8x8xf32> to vector<8x8xbf16>
    %c0_1 = arith.constant 0 : index
    %c0_2 = arith.constant 0 : index
    %2 = vector.load %arg2[%c0_1, %c0_2] : memref<8x640xbf16, #tpu.memory_space<vmem>>, vector<8x640xbf16>
    %cst = arith.constant dense<0.000000e+00> : vector<8x640xf32>
    %3 = tpu.matmul %1, %2, %cst {dimension_numbers = #tpu.dot_dimension_numbers<[1], [0], [0], [1], [0, 0, 1, 1], [], []>} : vector<8x8xbf16>, vector<8x640xbf16>, vector<8x640xf32> -> vector<8x640xf32>
    %c0_3 = arith.constant 0 : index
    %c0_4 = arith.constant 0 : index
    %4 = vector.load %arg3[%c0_3, %c0_4] : memref<1x640xf32, #tpu.memory_space<vmem>>, vector<1x640xf32>
    %5 = vector.broadcast %4 : vector<1x640xf32> to vector<8x640xf32>
    %6 = arith.addf %3, %5 : vector<8x640xf32>
    %cst_5 = arith.constant 0.000000e+00 : f32
    %7 = vector.broadcast %cst_5 : f32 to vector<8x640xf32>
    %8 = arith.maximumf %6, %7 : vector<8x640xf32>
    %cst_6 = arith.constant 0.000000e+00 : f32
    %9 = vector.broadcast %cst_6 : f32 to vector<8x8xf32>
    %10 = vector.extract_strided_slice %8 {offsets = [0, 0], sizes = [8, 128], strides = [1, 1]} : vector<8x640xf32> to vector<8x128xf32>
    %11 = arith.truncf %10 : vector<8x128xf32> to vector<8x128xbf16>
    %c0_7 = arith.constant 0 : index
    %c0_8 = arith.constant 0 : index
    %12 = vector.load %arg6[%c0_7, %c0_8] : memref<640x8xbf16, #tpu.memory_space<vmem>>, vector<128x8xbf16>
    %cst_9 = arith.constant dense<0.000000e+00> : vector<8x8xf32>
    %13 = tpu.matmul %11, %12, %cst_9 {dimension_numbers = #tpu.dot_dimension_numbers<[1], [0], [0], [1], [0, 0, 1, 1], [], []>} : vector<8x128xbf16>, vector<128x8xbf16>, vector<8x8xf32> -> vector<8x8xf32>
    %14 = arith.addf %9, %13 : vector<8x8xf32>
    %15 = vector.extract_strided_slice %8 {offsets = [0, 128], sizes = [8, 128], strides = [1, 1]} : vector<8x640xf32> to vector<8x128xf32>
    %16 = arith.truncf %15 : vector<8x128xf32> to vector<8x128xbf16>
    %c0_10 = arith.constant 0 : index
    %c0_11 = arith.constant 0 : index
    %17 = vector.load %arg4[%c0_10, %c0_11] : memref<384x384xbf16, #tpu.memory_space<vmem>>, vector<128x128xbf16>
    %cst_12 = arith.constant dense<0.000000e+00> : vector<8x128xf32>
    %18 = tpu.matmul %16, %17, %cst_12 {dimension_numbers = #tpu.dot_dimension_numbers<[1], [0], [0], [1], [0, 0, 1, 1], [], []>} : vector<8x128xbf16>, vector<128x128xbf16>, vector<8x128xf32> -> vector<8x128xf32>
    %c0_13 = arith.constant 0 : index
    %c0_14 = arith.constant 0 : index
    %19 = vector.load %arg5[%c0_13, %c0_14] : memref<1x384xf32, #tpu.memory_space<vmem>>, vector<1x128xf32>
    %20 = vector.broadcast %19 : vector<1x128xf32> to vector<8x128xf32>
    %21 = arith.addf %18, %20 : vector<8x128xf32>
    %cst_15 = arith.constant 0.000000e+00 : f32
    %22 = vector.broadcast %cst_15 : f32 to vector<8x128xf32>
    %23 = arith.maximumf %21, %22 : vector<8x128xf32>
    %24 = arith.truncf %23 : vector<8x128xf32> to vector<8x128xbf16>
    %c128 = arith.constant 128 : index
    %c0_16 = arith.constant 0 : index
    %25 = vector.load %arg6[%c128, %c0_16] : memref<640x8xbf16, #tpu.memory_space<vmem>>, vector<128x8xbf16>
    %cst_17 = arith.constant dense<0.000000e+00> : vector<8x8xf32>
    %26 = tpu.matmul %24, %25, %cst_17 {dimension_numbers = #tpu.dot_dimension_numbers<[1], [0], [0], [1], [0, 0, 1, 1], [], []>} : vector<8x128xbf16>, vector<128x8xbf16>, vector<8x8xf32> -> vector<8x8xf32>
    %27 = arith.addf %14, %26 : vector<8x8xf32>
    %28 = vector.extract_strided_slice %8 {offsets = [0, 256], sizes = [8, 128], strides = [1, 1]} : vector<8x640xf32> to vector<8x128xf32>
    %29 = arith.truncf %28 : vector<8x128xf32> to vector<8x128xbf16>
    %c128_18 = arith.constant 128 : index
    %c128_19 = arith.constant 128 : index
    %30 = vector.load %arg4[%c128_18, %c128_19] : memref<384x384xbf16, #tpu.memory_space<vmem>>, vector<128x128xbf16>
    %cst_20 = arith.constant dense<0.000000e+00> : vector<8x128xf32>
    %31 = tpu.matmul %29, %30, %cst_20 {dimension_numbers = #tpu.dot_dimension_numbers<[1], [0], [0], [1], [0, 0, 1, 1], [], []>} : vector<8x128xbf16>, vector<128x128xbf16>, vector<8x128xf32> -> vector<8x128xf32>
    %c0_21 = arith.constant 0 : index
    %c128_22 = arith.constant 128 : index
    %32 = vector.load %arg5[%c0_21, %c128_22] : memref<1x384xf32, #tpu.memory_space<vmem>>, vector<1x128xf32>
    %33 = vector.broadcast %32 : vector<1x128xf32> to vector<8x128xf32>
    %34 = arith.addf %31, %33 : vector<8x128xf32>
    %cst_23 = arith.constant 0.000000e+00 : f32
    %35 = vector.broadcast %cst_23 : f32 to vector<8x128xf32>
    %36 = arith.maximumf %34, %35 : vector<8x128xf32>
    %37 = arith.truncf %36 : vector<8x128xf32> to vector<8x128xbf16>
    %c256 = arith.constant 256 : index
    %c0_24 = arith.constant 0 : index
    %38 = vector.load %arg6[%c256, %c0_24] : memref<640x8xbf16, #tpu.memory_space<vmem>>, vector<128x8xbf16>
    %cst_25 = arith.constant dense<0.000000e+00> : vector<8x8xf32>
    %39 = tpu.matmul %37, %38, %cst_25 {dimension_numbers = #tpu.dot_dimension_numbers<[1], [0], [0], [1], [0, 0, 1, 1], [], []>} : vector<8x128xbf16>, vector<128x8xbf16>, vector<8x8xf32> -> vector<8x8xf32>
    %40 = arith.addf %27, %39 : vector<8x8xf32>
    %41 = vector.extract_strided_slice %8 {offsets = [0, 384], sizes = [8, 128], strides = [1, 1]} : vector<8x640xf32> to vector<8x128xf32>
    %42 = arith.truncf %41 : vector<8x128xf32> to vector<8x128xbf16>
    %c384 = arith.constant 384 : index
    %c0_26 = arith.constant 0 : index
    %43 = vector.load %arg6[%c384, %c0_26] : memref<640x8xbf16, #tpu.memory_space<vmem>>, vector<128x8xbf16>
    %cst_27 = arith.constant dense<0.000000e+00> : vector<8x8xf32>
    %44 = tpu.matmul %42, %43, %cst_27 {dimension_numbers = #tpu.dot_dimension_numbers<[1], [0], [0], [1], [0, 0, 1, 1], [], []>} : vector<8x128xbf16>, vector<128x8xbf16>, vector<8x8xf32> -> vector<8x8xf32>
    %45 = arith.addf %40, %44 : vector<8x8xf32>
    %46 = vector.extract_strided_slice %8 {offsets = [0, 512], sizes = [8, 128], strides = [1, 1]} : vector<8x640xf32> to vector<8x128xf32>
    %47 = arith.truncf %46 : vector<8x128xf32> to vector<8x128xbf16>
    %c256_28 = arith.constant 256 : index
    %c256_29 = arith.constant 256 : index
    %48 = vector.load %arg4[%c256_28, %c256_29] : memref<384x384xbf16, #tpu.memory_space<vmem>>, vector<128x128xbf16>
    %cst_30 = arith.constant dense<0.000000e+00> : vector<8x128xf32>
    %49 = tpu.matmul %47, %48, %cst_30 {dimension_numbers = #tpu.dot_dimension_numbers<[1], [0], [0], [1], [0, 0, 1, 1], [], []>} : vector<8x128xbf16>, vector<128x128xbf16>, vector<8x128xf32> -> vector<8x128xf32>
    %c0_31 = arith.constant 0 : index
    %c256_32 = arith.constant 256 : index
    %50 = vector.load %arg5[%c0_31, %c256_32] : memref<1x384xf32, #tpu.memory_space<vmem>>, vector<1x128xf32>
    %51 = vector.broadcast %50 : vector<1x128xf32> to vector<8x128xf32>
    %52 = arith.addf %49, %51 : vector<8x128xf32>
    %cst_33 = arith.constant 0.000000e+00 : f32
    %53 = vector.broadcast %cst_33 : f32 to vector<8x128xf32>
    %54 = arith.maximumf %52, %53 : vector<8x128xf32>
    %55 = arith.truncf %54 : vector<8x128xf32> to vector<8x128xbf16>
    %c512 = arith.constant 512 : index
    %c0_34 = arith.constant 0 : index
    %56 = vector.load %arg6[%c512, %c0_34] : memref<640x8xbf16, #tpu.memory_space<vmem>>, vector<128x8xbf16>
    %cst_35 = arith.constant dense<0.000000e+00> : vector<8x8xf32>
    %57 = tpu.matmul %55, %56, %cst_35 {dimension_numbers = #tpu.dot_dimension_numbers<[1], [0], [0], [1], [0, 0, 1, 1], [], []>} : vector<8x128xbf16>, vector<128x8xbf16>, vector<8x8xf32> -> vector<8x8xf32>
    %58 = arith.addf %45, %57 : vector<8x8xf32>
    %c0_36 = arith.constant 0 : index
    %c0_37 = arith.constant 0 : index
    %59 = vector.load %arg7[%c0_36, %c0_37] : memref<1x8xf32, #tpu.memory_space<vmem>>, vector<1x8xf32>
    %60 = vector.broadcast %59 : vector<1x8xf32> to vector<8x8xf32>
    %61 = arith.addf %58, %60 : vector<8x8xf32>
    %c0_38 = arith.constant 0 : index
    %c0_39 = arith.constant 0 : index
    %62 = vector.load %arg8[%c0_38, %c0_39] : memref<8x8xf32, #tpu.memory_space<vmem>>, vector<8x8xf32>
    tpu.vector_store %arg8[%c0_38, %c0_39], %61 {strides = array<i32>} : memref<8x8xf32, #tpu.memory_space<vmem>>, vector<8x8xf32>,
    return
  }
  func.func @transform_0(%arg0: i32) -> (i32, i32) {
    %c0_i32 = arith.constant 0 : i32
    %c0_i32_0 = arith.constant 0 : i32
    return %arg0, %c0_i32 : i32, i32
  }
  func.func @transform_1(%arg0: i32) -> (i32, i32) {
    %c0_i32 = arith.constant 0 : i32
    %c0_i32_0 = arith.constant 0 : i32
    %c0_i32_1 = arith.constant 0 : i32
    return %c0_i32, %c0_i32_0 : i32, i32
  }
  func.func @transform_2(%arg0: i32) -> (i32, i32) {
    %c0_i32 = arith.constant 0 : i32
    %c0_i32_0 = arith.constant 0 : i32
    %c0_i32_1 = arith.constant 0 : i32
    return %c0_i32, %c0_i32_0 : i32, i32
  }
  func.func @transform_3(%arg0: i32) -> (i32, i32) {
    %c0_i32 = arith.constant 0 : i32
    %c0_i32_0 = arith.constant 0 : i32
    %c0_i32_1 = arith.constant 0 : i32
    return %c0_i32, %c0_i32_0 : i32, i32
  }
  func.func @transform_4(%arg0: i32) -> (i32, i32) {
    %c0_i32 = arith.constant 0 : i32
    %c0_i32_0 = arith.constant 0 : i32
    %c0_i32_1 = arith.constant 0 : i32
    return %c0_i32, %c0_i32_0 : i32, i32
  }
  func.func @transform_5(%arg0: i32) -> (i32, i32) {
    %c0_i32 = arith.constant 0 : i32
    %c0_i32_0 = arith.constant 0 : i32
    %c0_i32_1 = arith.constant 0 : i32
    return %c0_i32, %c0_i32_0 : i32, i32
  }
  func.func @transform_6(%arg0: i32) -> (i32, i32) {
    %c0_i32 = arith.constant 0 : i32
    %c0_i32_0 = arith.constant 0 : i32
    %c0_i32_1 = arith.constant 0 : i32
    return %c0_i32, %c0_i32_0 : i32, i32
  }
  func.func @transform_7(%arg0: i32) -> (i32, i32) {
    %c0_i32 = arith.constant 0 : i32
    %c0_i32_0 = arith.constant 0 : i32
    return %arg0, %c0_i32 : i32, i32
  }
}

</mosaic_0001>

<bundles_post_ra>
// kernel: tpu_custom_call.1
= control target key start
LH: loop header
LB: loop body
LE: loop exit
PB: predicated region body
PF: predicated region fallthrough
CT: control target
= control target key end

     0   :  { %12 = vsyncpa [#allocation3], 0  ;;  %s1884_s0 = inlined_call_operand.vmem [shape: f32[8,8], index: 0, kind: input, shape index: {}]   ;;  %s1885_s1 = inlined_call_operand.vmem [shape: bf16[8,640], index: 1, kind: input, shape index: {}]   ;;  %s1886_s2 = inlined_call_operand.vmem [shape: f32[1,640], index: 2, kind: input, shape index: {}]   ;;  %s1887_s3 = inlined_call_operand.hbm [shape: bf16[384,384], index: 3, kind: input, shape index: {}]   ;;  %s1888_s4 = inlined_call_operand.vmem [shape: f32[1,384], index: 4, kind: input, shape index: {}]   ;;  %s1889_s5 = inlined_call_operand.vmem [shape: bf16[640,8], index: 5, kind: input, shape index: {}]   ;;  %s1890_s6 = inlined_call_operand.vmem [shape: f32[1,8], index: 6, kind: input, shape index: {}]   ;;  %s1891_s7 = inlined_call_operand.hbm [shape: f32[8,8], index: 7, kind: output, shape index: {}]  }
   0x1   :  { %13 = vsyncpa [#allocation4], 0  ;;  %s1563_s24 = smov [#allocation2]  }
   0x2   :  { %s25_s25 = sshll.u32 %s1563_s24, 4  ;;  %s26_s25 = int_to_ptr.vmem [resolvable:$true] %s25_s25 }
   0x3   :  { %s1527_s26 = scalar_lea.vmem %s26_s25, 9216  ;;  %p1532_p1 = scmp.lt.s32.totalorder %s26_s25, %s26_s25 }
   0x4   :  { %p1528_p0 = scmp.ne.s32.totalorder %s26_s25, %s1527_s26  ;;  %p1533_p2 = scmp.lt.s32.totalorder %s1527_s26, %s1527_s26 }
   0x6   :  { %p1534_p3 = por %p1533_p2, %p1532_p1 }
   0x8   :  { %p1535_p4 = pnand %p1534_p3, %p1528_p0 }
   0xa   :  { %1538 = shalt.err (!%p1535_p4)
}
   0xb   :  { %s1564_s27 = smov 192   ;;  %s1565_s28 = smov 12  }
   0xc   :  { %31 = dma.hbm_to_vmem [thread:$0]  %s1887_s3, 9216, %s26_s25, [#allocation3], %s1564_s27, %s1564_s27, %s1565_s28  }
   0xd   :  { %1559 = dma.done.wait [#allocation3], 9216  }
   0xe   :  { %1560 = vsyncadd [#allocation3], 4294958080  ;;  %v1566_v0 = vmov 0   ;;  %v44_v1 = vld [vmem:[%s1885_s1] sm:$0xff]  ;;  %vm91_vm0 = vcmask 1043456   ;;  %v45_v3 = vld [vmem:[%s1885_s1 + $0x8] sm:$0xff]  ;;  %v49_v29 = vlaneseq }
   0xf   :  { %139 = vmatprep.mubr.bf16.mxu0 %v1566_v0  ;;  %180 = vmatprep.mubr.bf16.mxu1 %v1566_v0  ;;  %v42_v2 = vld [vmem:[%s1884_s0] sm:$0xff]  ;;  %v1126_v4 = vcombine.high %v44_v1, %v44_v1  ;;  %v1125_v5 = vcombine.low %v44_v1, %v44_v1  ;;  %v1128_v6 = vcombine.high %v45_v3, %v45_v3  ;;  %vm87_vm1 = vcmask 64512   ;;  %v1454_v11 = vld [vmem:[#allocation2 + $0xa8] ss:$12 sps:$4 sm:$0xff]   ;;  %v1455_v13 = vld [vmem:[#allocation2 + $0x90] ss:$12 sps:$4 sm:$0xff]  }
  0x10   :  { %v1127_v7 = vcombine.low %v45_v3, %v45_v3  ;;  %v43_v9 = vpack.c.bf16 %v42_v2, %v42_v2  ;;  %v1567_v12 = vmov 0.0   ;;  %v1456_v14 = vld [vmem:[#allocation2 + $0x78] ss:$12 sps:$4 sm:$0xff]   ;;  %v1457_v15 = vld [vmem:[#allocation2 + $0x60] ss:$12 sps:$4 sm:$0xff]   ;;  %vm1568_vm2 = vmmov 0  }
  0x11   :  { %1130 = vmatprep.subr.msk.bf16.mxu0 %vm91_vm0, %v1126_v4  ;;  %v93_v8 = vsel %vm91_vm0, %v1125_v5, 0  ;;  %1132 = vmatprep.subr.msk.bf16.mxu1 %vm91_vm0, %v1128_v6  ;;  %v1458_v16 = vld [vmem:[#allocation2 + $0x48] ss:$12 sps:$4 sm:$0xff]   ;;  %v1459_v17 = vld [vmem:[#allocation2 + $0x30] ss:$12 sps:$4 sm:$0xff]   ;;  %v1474_v25 = vld [vmem:[%s1889_s5 + $0x60] sm:$0xff]  }
  0x12   :  { %122 = vmatpush1.bf16.msra.mxu0 %v93_v8  ;;  %v99_v10 = vsel %vm91_vm0, %v1127_v7, 0  ;;  %v1460_v18 = vld [vmem:[#allocation2 + $0x18] ss:$12 sps:$4 sm:$0xff]   ;;  %v1461_v19 = vld [vmem:[#allocation2] ss:$12 sps:$4 sm:$0xff]   ;;  %v1472_v23 = vld [vmem:[%s1889_s5 + $0x70] sm:$0xff]  }
  0x13   :  { %163 = vmatpush1.bf16.msra.mxu1 %v99_v10  ;;  %1277 = vmatprep.subr.bf16.mxu0 %v1567_v12  ;;  %v1470_v20 = vld [vmem:[%s1885_s1 + $0x10] ss:$0 sps:$4 sm:$0xff]   ;;  %v1471_v22 = vld [vmem:[%s1889_s5 + $0x78] sm:$0xff]   ;;  %v1473_v24 = vld [vmem:[%s1889_s5 + $0x68] sm:$0xff]   ;;  %v1678_v30 = vshrl.u32 %v49_v29, 7  ;;  %s1569_s21 = smov [#allocation5]  }
  0x14   :  { %1283 = vmatprep.subr.bf16.mxu1 %v1567_v12  ;;  %v105_v21 = vsel %vm91_vm0, %v1470_v20, 0  ;;  %v1475_v26 = vld [vmem:[%s1889_s5 + $0x58] sm:$0xff]   ;;  %v1476_v27 = vld [vmem:[%s1889_s5 + $0x50] sm:$0xff]   ;;  %v1477_v28 = vld [vmem:[%s1889_s5 + $0x48] sm:$0xff]   ;;  %s1116_s22 = sshll.u32 %s1569_s21, 4  ;;  %s1117_s22 = int_to_ptr.vmem [resolvable:$true] %s1116_s22 }
  0x15   :  { %1131 = vmatmul.mubr.msk.bf16.vlgmr.msra.gmra.mxu0 %vm87_vm1, %v43_v9  ;;  %v55_v31 = vsub.s32 1, %v1678_v30  ;;  %v1684_v32 = vld [vmem:[%s1886_s2] sm:$0x1f]  ;;  %v1462_v43 = vld [vmem:[%s1889_s5 + $0x38] sm:$0xff]   ;;  %v1463_v46 = vld [vmem:[%s1889_s5 + $0x30] sm:$0xff]   ;;  %v51_v50 = vsub.s32 0, %v1678_v30  ;;  %p1544_p6 = scmp.lt.s32.totalorder %s1117_s22, %s1117_s22 }
  0x16   :  { %1133 = vmatmul.mubr.msk.bf16.vlgmr.msra.gmra.mxu1 %vm87_vm1, %v43_v9  ;;  %1279 = vmatprep.mubr.msk.bf16.mxu0 %vm1568_vm2, %v1567_v12  ;;  %v1464_v47 = vld [vmem:[%s1889_s5 + $0x28] sm:$0xff]   ;;  %v1465_v48 = vld [vmem:[%s1889_s5 + $0x20] sm:$0xff]   ;;  %v1466_v49 = vld [vmem:[%s1889_s5 + $0x18] sm:$0xff]  }
  0x17   :  { %1284 = vmatpush3.bf16.msra.mxu1 %v1454_v11  ;;  %1299 = vmatprep.mubr.msk.bf16.mxu1 %vm1568_vm2, %v1567_v12  ;;  %v56_v33 = vrot.slane %v1684_v32, %v55_v31  ;;  %v1467_v51 = vld [vmem:[%s1889_s5 + $0x10] sm:$0xff]   ;;  %v52_v52 = vrot.slane %v1684_v32, %v51_v50  ;;  %v1468_v53 = vld [vmem:[%s1889_s5 + $0x8] sm:$0xff]   ;;  %v1469_v55 = vld [vmem:[%s1889_s5] sm:$0xff]   ;;  %v63_v31 = vsub.s32 3, %v1678_v30 }
  0x18   :  { %1285 = vmatprep.subr.bf16.mxu1 %v1567_v12  ;;  %1278 = vmatpush3.bf16.msra.mxu0 %v105_v21  ;;  %v1478_v58 = vld [vmem:[%s1889_s5 + $0x40] sm:$0xff]   ;;  %v1479_v5 = vld [vmem:[#allocation2 + $0x16c] ss:$12 sps:$4 sm:$0xff]  }
  0x19   :  { %1303 = vmatprep.subr.bf16.mxu0 %v1567_v12  ;;  %v1135_v63 = vld [vmem:[%s1888_s4] ss:$0 sm:$0xff]  ;;  %v1482_v10 = vld [vmem:[#allocation2 + $0x124] ss:$12 sps:$4 sm:$0xff]   ;;  %v1483_v11 = vld [vmem:[#allocation2 + $0x10c] ss:$12 sps:$4 sm:$0xff]  }
  0x1a   :  { %v1480_v8 = vld [vmem:[#allocation2 + $0x154] ss:$12 sps:$4 sm:$0xff]   ;;  %v1491_v29 = vld [vmem:[%s1889_s5 + $0xd8] sm:$0xff]  }
  0x1b   :  { %1286 = vmatpush3.bf16.msra.mxu1 %v1455_v13  ;;  %v59_v13 = vsub.s32 2, %v1678_v30 }
  0x1c   :  { %1287 = vmatprep.subr.bf16.mxu1 %v1567_v12 }
  0x1d   :  { %1280 = vmatmul.mubr.msk.bf16.vlgmr.msra.gmra.mxu0 %vm87_vm1, %v43_v9  ;;  %v1481_v9 = vld [vmem:[#allocation2 + $0x13c] ss:$12 sps:$4 sm:$0xff]  }
  0x1e   :  { %1304 = vmatpush3.bf16.msra.mxu0 %v1471_v22  ;;  %1319 = vmatprep.mubr.msk.bf16.mxu0 %vm1568_vm2, %v1567_v12 }
  0x1f   :  { %1288 = vmatpush3.bf16.msra.mxu1 %v1456_v14  ;;  %1305 = vmatprep.subr.bf16.mxu0 %v1567_v12  ;;  %v1484_v14 = vld [vmem:[#allocation2 + $0xf4] ss:$12 sps:$4 sm:$0xff]  }
  0x20   :  { %1289 = vmatprep.subr.bf16.mxu1 %v1567_v12 }
  0x22   :  { %1306 = vmatpush3.bf16.msra.mxu0 %v1472_v23  ;;  %v1487_v23 = vld [vmem:[%s1889_s5 + $0xf8] sm:$0xff]  }
  0x23   :  { %1290 = vmatpush3.bf16.msra.mxu1 %v1457_v15  ;;  %1307 = vmatprep.subr.bf16.mxu0 %v1567_v12  ;;  %v60_v15 = vrot.slane %v1684_v32, %v59_v13 }
  0x24   :  { %1291 = vmatprep.subr.bf16.mxu1 %v1567_v12 }
  0x26   :  { %1308 = vmatpush3.bf16.msra.mxu0 %v1473_v24 }
  0x27   :  { %1292 = vmatpush3.bf16.msra.mxu1 %v1458_v16  ;;  %1309 = vmatprep.subr.bf16.mxu0 %v1567_v12  ;;  %v1485_v16 = vld [vmem:[#allocation2 + $0xdc] ss:$12 sps:$4 sm:$0xff]  }
  0x28   :  { %1293 = vmatprep.subr.bf16.mxu1 %v1567_v12 }
  0x2a   :  { %1310 = vmatpush3.bf16.msra.mxu0 %v1474_v25 }
  0x2b   :  { %1294 = vmatpush3.bf16.msra.mxu1 %v1459_v17  ;;  %1311 = vmatprep.subr.bf16.mxu0 %v1567_v12 }
  0x2c   :  { %1295 = vmatprep.subr.bf16.mxu1 %v1567_v12 }
  0x2e   :  { %1312 = vmatpush3.bf16.msra.mxu0 %v1475_v26  ;;  %v1488_v26 = vld [vmem:[%s1889_s5 + $0xf0] sm:$0xff]  }
  0x2f   :  { %1296 = vmatpush3.bf16.msra.mxu1 %v1460_v18  ;;  %1313 = vmatprep.subr.bf16.mxu0 %v1567_v12 }
  0x30   :  { %1297 = vmatprep.subr.bf16.mxu1 %v1567_v12 }
  0x32   :  { %1314 = vmatpush3.bf16.msra.mxu0 %v1476_v27  ;;  %v1489_v27 = vld [vmem:[%s1889_s5 + $0xe8] sm:$0xff]  }
  0x33   :  { %1298 = vmatpush3.bf16.msra.mxu1 %v1461_v19  ;;  %1315 = vmatprep.subr.bf16.mxu0 %v1567_v12  ;;  %v1486_v19 = vld [vmem:[#allocation2 + $0xc4] ss:$12 sps:$4 sm:$0xff]  }
  0x34   :  { %1323 = vmatprep.subr.bf16.mxu1 %v1567_v12 }
  0x36   :  { %1316 = vmatpush3.bf16.msra.mxu0 %v1477_v28  ;;  %v1490_v28 = vld [vmem:[%s1889_s5 + $0xe0] sm:$0xff]  }
  0x37   :  { %1317 = vmatprep.subr.bf16.mxu0 %v1567_v12 }
  0x3a   :  { %1318 = vmatpush3.bf16.msra.mxu0 %v1478_v58  ;;  %v1503_v58 = vld [vmem:[#allocation2 + $0x230] ss:$12 sps:$4 sm:$0xff]  }
  0x3b   :  { %1343 = vmatprep.subr.bf16.mxu0 %v1567_v12 }
  0xd5   :  { %v141_v34 = vpop.f32.mrf.mxu0 }
  0xd6   :  { %v1687_v35 = vpop.f32.mrf.mxu1  ;;  %v142_v54 = vadd.f32 %v141_v34, %v52_v52  ;;  %v64_v34 = vrot.slane %v1684_v32, %v63_v31  ;;  %v1160_v52 = vld [vmem:[%s1888_s4 + $0x1] ss:$0 sm:$0xff] }
  0xd7   :  { %v143_v36 = vpop.f32.mrf.mxu0  ;;  %v183_v17 = vadd.f32 %v1687_v35, %v60_v15  ;;  %v1493_v35 = vld [vmem:[%s1889_s5 + $0xc8] sm:$0xff]   ;;  %v1514_v15 = vld [vmem:[%s1889_s5 + $0x120] sm:$0xff]  }
  0xd8   :  { %v144_v37 = vadd.f32 %v143_v36, %v56_v33  ;;  %v1689_v38 = vpop.f32.mrf.mxu1  ;;  %v229_v56 = vmax.f32 %v142_v54, 0.0  ;;  %v1492_v33 = vld [vmem:[%s1889_s5 + $0xd0] sm:$0xff]  }
  0xd9   :  { %v145_v39 = vpop.f32.mrf.mxu0  ;;  %v231_v20 = vmax.f32 %v183_v17, 0.0  ;;  %v185_v36 = vadd.f32 %v1689_v38, %v64_v34  ;;  %v1495_v38 = vld [vmem:[%s1889_s5 + $0xb8] sm:$0xff]   ;;  %v1516_v17 = vld [vmem:[%s1889_s5 + $0x110] sm:$0xff]  }
  0xda   :  { %v230_v40 = vmax.f32 %v144_v37, 0.0  ;;  %v186_v41 = vpop.f32.mrf.mxu1  ;;  %v234_v57 = vpack.c.bf16 %v229_v56, %v229_v56  ;;  %v1494_v37 = vld [vmem:[%s1889_s5 + $0xc0] sm:$0xff]  }
  0xdb   :  { %v146_v42 = vpop.f32.mrf.mxu0  ;;  %v557_v24 = vpack.c.bf16 %v231_v20, %v231_v20  ;;  %v232_v39 = vmax.f32 %v185_v36, 0.0  ;;  %v1496_v41 = vld [vmem:[%s1889_s5 + $0xb0] sm:$0xff]   ;;  %v1518_v20 = vld [vmem:[%s1889_s5 + $0x100] sm:$0xff]  }
  0xdc   :  { %v251_v44 = vpack.c.bf16 %v230_v40, %v230_v40  ;;  %v187_v45 = vpop.f32.mrf.mxu1  ;;  %v1497_v42 = vld [vmem:[%s1889_s5 + $0xa8] sm:$0xff]  }
  0xdd   :  { %v1733_v59 = vpop.f32.mrf.mxu0  ;;  %v776_v40 = vpack.c.bf16 %v232_v39, %v232_v39  ;;  %v1500_v45 = vld [vmem:[%s1889_s5 + $0x90] sm:$0xff]  }
  0xde   :  { %1300 = vmatmul.mubr.bf16.vlgmr.msra.gmra.mxu1 %v251_v44  ;;  %v1499_v44 = vld [vmem:[%s1889_s5 + $0x98] sm:$0xff]  }
  0xdf   :  { %1324 = vmatpush3.bf16.msra.mxu1 %v1462_v43  ;;  %1339 = vmatprep.mubr.msk.bf16.mxu1 %vm1568_vm2, %v1567_v12  ;;  %v1281_v60 = vpop.f32.mrf.mxu0  ;;  %v1498_v43 = vld [vmem:[%s1889_s5 + $0xa0] sm:$0xff]  }
  0xe0   :  { %1325 = vmatprep.subr.bf16.mxu1 %v1567_v12 }
  0xe1   :  { %v226_v61 = vpop.f32.mrf.mxu0 }
  0xe3   :  { %1326 = vmatpush3.bf16.msra.mxu1 %v1463_v46  ;;  %v1282_v62 = vpop.f32.mrf.mxu0  ;;  %v1501_v46 = vld [vmem:[%s1889_s5 + $0x88] sm:$0xff]  }
  0xe4   :  { %1327 = vmatprep.subr.bf16.mxu1 %v1567_v12  ;;  %v1504_v62 = vld [vmem:[#allocation2 + $0x218] ss:$12 sps:$4 sm:$0xff]  }
  0xe7   :  { %1328 = vmatpush3.bf16.msra.mxu1 %v1464_v47  ;;  %v1502_v47 = vld [vmem:[%s1889_s5 + $0x80] sm:$0xff]  }
  0xe8   :  { %1329 = vmatprep.subr.bf16.mxu1 %v1567_v12 }
  0xeb   :  { %1330 = vmatpush3.bf16.msra.mxu1 %v1465_v48 }
  0xec   :  { %1331 = vmatprep.subr.bf16.mxu1 %v1567_v12 }
  0xef   :  { %1332 = vmatpush3.bf16.msra.mxu1 %v1466_v49 }
  0xf0   :  { %1333 = vmatprep.subr.bf16.mxu1 %v1567_v12 }
  0xf3   :  { %1334 = vmatpush3.bf16.msra.mxu1 %v1467_v51 }
  0xf4   :  { %1335 = vmatprep.subr.bf16.mxu1 %v1567_v12 }
  0xf7   :  { %1336 = vmatpush3.bf16.msra.mxu1 %v1468_v53 }
  0xf8   :  { %1337 = vmatprep.subr.bf16.mxu1 %v1567_v12 }
  0xfb   :  { %1338 = vmatpush3.bf16.msra.mxu1 %v1469_v55 }
  0xfc   :  { %1363 = vmatprep.subr.bf16.mxu1 %v1567_v12 }
  0xfe   :  { %1340 = vmatmul.mubr.bf16.vlgmr.msra.gmra.mxu1 %v234_v57 }
  0xff   :  { %1379 = vmatprep.mubr.msk.bf16.mxu1 %vm1568_vm2, %v1567_v12  ;;  %1364 = vmatpush3.bf16.msra.mxu1 %v1495_v38 }
 0x100   :  { %1365 = vmatprep.subr.bf16.mxu1 %v1567_v12 }
 0x103   :  { %1366 = vmatpush3.bf16.msra.mxu1 %v1496_v41 }
 0x104   :  { %1367 = vmatprep.subr.bf16.mxu1 %v1567_v12 }
 0x107   :  { %1368 = vmatpush3.bf16.msra.mxu1 %v1497_v42 }
 0x108   :  { %1369 = vmatprep.subr.bf16.mxu1 %v1567_v12 }
 0x10b   :  { %1370 = vmatpush3.bf16.msra.mxu1 %v1498_v43 }
 0x10c   :  { %1371 = vmatprep.subr.bf16.mxu1 %v1567_v12 }
 0x10f   :  { %1372 = vmatpush3.bf16.msra.mxu1 %v1499_v44 }
 0x110   :  { %1373 = vmatprep.subr.bf16.mxu1 %v1567_v12 }
 0x113   :  { %1374 = vmatpush3.bf16.msra.mxu1 %v1500_v45 }
 0x114   :  { %1375 = vmatprep.subr.bf16.mxu1 %v1567_v12 }
 0x117   :  { %1376 = vmatpush3.bf16.msra.mxu1 %v1501_v46 }
 0x118   :  { %1377 = vmatprep.subr.bf16.mxu1 %v1567_v12 }
 0x11b   :  { %1378 = vmatpush3.bf16.msra.mxu1 %v1502_v47 }
 0x11c   :  { %1403 = vmatprep.subr.bf16.mxu1 %v1567_v12 }
 0x19e   :  { %v357_v0 = vpop.f32.mrf.mxu1 }
 0x19f   :  { %v358_v1 = vadd.f32 %v1135_v63, %v357_v0  ;;  %v1505_v63 = vld [vmem:[#allocation2 + $0x200] ss:$12 sps:$4 sm:$0xff]   ;;  %v1506_v0 = vld [vmem:[#allocation2 + $0x1e8] ss:$12 sps:$4 sm:$0xff]  }
 0x1a0   :  { %v1301_v2 = vpop.f32.mrf.mxu1 }
 0x1a1   :  { %v363_v3 = vmax.f32 %v358_v1, 0.0  ;;  %v1507_v1 = vld [vmem:[#allocation2 + $0x1d0] ss:$12 sps:$4 sm:$0xff]   ;;  %v67_v2 = vsub.s32 4, %v1678_v30 }
 0x1a2   :  { %v360_v4 = vpop.f32.mrf.mxu1 }
 0x1a3   :  { %v364_v6 = vpack.c.bf16 %v363_v3, %v363_v3  ;;  %v1508_v3 = vld [vmem:[#allocation2 + $0x1b8] ss:$12 sps:$4 sm:$0xff]   ;;  %v68_v4 = vrot.slane %v1684_v32, %v67_v2 }
 0x1a4   :  { %v1302_v7 = vpop.f32.mrf.mxu1  ;;  %v1511_v32 = vld [vmem:[%s1889_s5 + $0x138] sm:$0xff]  }
 0x1a5   :  { %1320 = vmatmul.mubr.bf16.vlgmr.msra.gmra.mxu0 %v364_v6  ;;  %v224_v6 = vadd.f32 %v1733_v59, %v68_v4  ;;  %v1512_v59 = vld [vmem:[%s1889_s5 + $0x130] sm:$0xff]  }
 0x1a6   :  { %1344 = vmatpush3.bf16.msra.mxu0 %v1479_v5  ;;  %1359 = vmatprep.mubr.msk.bf16.mxu0 %vm1568_vm2, %v1567_v12  ;;  %v1509_v5 = vld [vmem:[#allocation2 + $0x1a0] ss:$12 sps:$4 sm:$0xff]  }
 0x1a7   :  { %1345 = vmatprep.subr.bf16.mxu0 %v1567_v12 }
 0x1aa   :  { %1346 = vmatpush3.bf16.msra.mxu0 %v1480_v8  ;;  %v1510_v8 = vld [vmem:[#allocation2 + $0x188] ss:$12 sps:$4 sm:$0xff]  }
 0x1ab   :  { %1347 = vmatprep.subr.bf16.mxu0 %v1567_v12 }
 0x1ae   :  { %1348 = vmatpush3.bf16.msra.mxu0 %v1481_v9  ;;  %v233_v9 = vmax.f32 %v224_v6, 0.0 }
 0x1af   :  { %1349 = vmatprep.subr.bf16.mxu0 %v1567_v12 }
 0x1b2   :  { %1350 = vmatpush3.bf16.msra.mxu0 %v1482_v10 }
 0x1b3   :  { %1351 = vmatprep.subr.bf16.mxu0 %v1567_v12 }
 0x1b6   :  { %1352 = vmatpush3.bf16.msra.mxu0 %v1483_v11  ;;  %v882_v11 = vpack.c.bf16 %v233_v9, %v233_v9 }
 0x1b7   :  { %1353 = vmatprep.subr.bf16.mxu0 %v1567_v12 }
 0x1ba   :  { %1354 = vmatpush3.bf16.msra.mxu0 %v1484_v14  ;;  %v1513_v14 = vld [vmem:[%s1889_s5 + $0x128] sm:$0xff]  }
 0x1bb   :  { %1355 = vmatprep.subr.bf16.mxu0 %v1567_v12 }
 0x1be   :  { %v1749_v18 = vpop.f32.mrf.mxu1  ;;  %1356 = vmatpush3.bf16.msra.mxu0 %v1485_v16  ;;  %v1515_v16 = vld [vmem:[%s1889_s5 + $0x118] sm:$0xff]  }
 0x1bf   :  { %1357 = vmatprep.subr.bf16.mxu0 %v1567_v12 }
 0x1c0   :  { %v1341_v21 = vpop.f32.mrf.mxu1 }
 0x1c2   :  { %v554_v22 = vpop.f32.mrf.mxu1  ;;  %1358 = vmatpush3.bf16.msra.mxu0 %v1486_v19  ;;  %v1517_v19 = vld [vmem:[%s1889_s5 + $0x108] sm:$0xff]  }
 0x1c3   :  { %1383 = vmatprep.subr.bf16.mxu0 %v1567_v12 }
 0x1c4   :  { %v1342_v25 = vpop.f32.mrf.mxu1 }
 0x1c5   :  { %1360 = vmatmul.mubr.bf16.vlgmr.msra.gmra.mxu0 %v557_v24 }
 0x1c6   :  { %1384 = vmatpush3.bf16.msra.mxu0 %v1487_v23  ;;  %1399 = vmatprep.mubr.msk.bf16.mxu0 %vm1568_vm2, %v1567_v12 }
 0x1c7   :  { %1385 = vmatprep.subr.bf16.mxu0 %v1567_v12 }
 0x1ca   :  { %1386 = vmatpush3.bf16.msra.mxu0 %v1488_v26 }
 0x1cb   :  { %1387 = vmatprep.subr.bf16.mxu0 %v1567_v12 }
 0x1ce   :  { %1388 = vmatpush3.bf16.msra.mxu0 %v1489_v27  ;;  %v1185_v27 = vld [vmem:[%s1888_s4 + $0x2] ss:$0 sm:$0xff]  ;;  %s1539_s4 = scalar_lea.vmem %s1117_s22, 128 }
 0x1cf   :  { %1389 = vmatprep.subr.bf16.mxu0 %v1567_v12  ;;  %p1540_p5 = scmp.ne.s32.totalorder %s1117_s22, %s1539_s4  ;;  %p1545_p7 = scmp.lt.s32.totalorder %s1539_s4, %s1539_s4 }
 0x1d1   :  { %p1546_p8 = por %p1545_p7, %p1544_p6 }
 0x1d2   :  { %1390 = vmatpush3.bf16.msra.mxu0 %v1490_v28 }
 0x1d3   :  { %1391 = vmatprep.subr.bf16.mxu0 %v1567_v12  ;;  %p1547_p9 = pnand %p1546_p8, %p1540_p5 }
 0x1d6   :  { %1392 = vmatpush3.bf16.msra.mxu0 %v1491_v29 }
 0x1d7   :  { %1393 = vmatprep.subr.bf16.mxu0 %v1567_v12 }
 0x1da   :  { %1394 = vmatpush3.bf16.msra.mxu0 %v1492_v33 }
 0x1db   :  { %1395 = vmatprep.subr.bf16.mxu0 %v1567_v12 }
 0x1de   :  { %1396 = vmatpush3.bf16.msra.mxu0 %v1493_v35 }
 0x1df   :  { %1397 = vmatprep.subr.bf16.mxu0 %v1567_v12 }
 0x1e2   :  { %1398 = vmatpush3.bf16.msra.mxu0 %v1494_v37 }
 0x1e3   :  { %1423 = vmatprep.subr.bf16.mxu0 %v1567_v12 }
 0x1e5   :  { %1400 = vmatmul.mubr.bf16.vlgmr.msra.gmra.mxu0 %v776_v40 }
 0x1e6   :  { %1439 = vmatprep.mubr.msk.bf16.mxu0 %vm1568_vm2, %v1567_v12  ;;  %1424 = vmatpush3.bf16.msra.mxu0 %v1511_v32 }
 0x1e7   :  { %1425 = vmatprep.subr.bf16.mxu0 %v1567_v12 }
 0x1ea   :  { %1426 = vmatpush3.bf16.msra.mxu0 %v1512_v59 }
 0x1eb   :  { %1427 = vmatprep.subr.bf16.mxu0 %v1567_v12 }
 0x1ee   :  { %1428 = vmatpush3.bf16.msra.mxu0 %v1513_v14 }
 0x1ef   :  { %1429 = vmatprep.subr.bf16.mxu0 %v1567_v12 }
 0x1f2   :  { %1430 = vmatpush3.bf16.msra.mxu0 %v1514_v15 }
 0x1f3   :  { %1431 = vmatprep.subr.bf16.mxu0 %v1567_v12 }
 0x1f6   :  { %1432 = vmatpush3.bf16.msra.mxu0 %v1515_v16 }
 0x1f7   :  { %1433 = vmatprep.subr.bf16.mxu0 %v1567_v12 }
 0x1fa   :  { %1434 = vmatpush3.bf16.msra.mxu0 %v1516_v17 }
 0x1fb   :  { %1435 = vmatprep.subr.bf16.mxu0 %v1567_v12 }
 0x1fe   :  { %1436 = vmatpush3.bf16.msra.mxu0 %v1517_v19 }
 0x1ff   :  { %1437 = vmatprep.subr.bf16.mxu0 %v1567_v12 }
 0x202   :  { %1438 = vmatpush3.bf16.msra.mxu0 %v1518_v20 }
 0x265   :  { %v1824_v48 = vpop.f32.mrf.mxu0 }
 0x266   :  { %v552_v21 = vadd.f32 %v1749_v18, %v1824_v48  ;;  %v1202_v18 = vld [vmem:[%s1890_s6] ss:$0 sm:$0xff] }
 0x267   :  { %v1321_v49 = vpop.f32.mrf.mxu0 }
 0x269   :  { %v466_v50 = vpop.f32.mrf.mxu0 }
 0x26b   :  { %v1322_v51 = vpop.f32.mrf.mxu0 }
 0x285   :  { %v663_v53 = vpop.f32.mrf.mxu0 }
 0x286   :  { %v664_v54 = vadd.f32 %v1160_v52, %v663_v53 }
 0x287   :  { %v1361_v55 = vpop.f32.mrf.mxu0 }
 0x288   :  { %v669_v56 = vmax.f32 %v664_v54, 0.0 }
 0x289   :  { %v666_v57 = vpop.f32.mrf.mxu0 }
 0x28a   :  { %v670_v60 = vpack.c.bf16 %v669_v56, %v669_v56 }
 0x28b   :  { %v1362_v61 = vpop.f32.mrf.mxu0 }
 0x28c   :  { %1380 = vmatmul.mubr.bf16.vlgmr.msra.gmra.mxu1 %v670_v60 }
 0x28d   :  { %1404 = vmatpush3.bf16.msra.mxu1 %v1503_v58  ;;  %1419 = vmatprep.mubr.msk.bf16.mxu1 %vm1568_vm2, %v1567_v12 }
 0x28e   :  { %1405 = vmatprep.subr.bf16.mxu1 %v1567_v12 }
 0x291   :  { %1406 = vmatpush3.bf16.msra.mxu1 %v1504_v62 }
 0x292   :  { %1407 = vmatprep.subr.bf16.mxu1 %v1567_v12 }
 0x295   :  { %1408 = vmatpush3.bf16.msra.mxu1 %v1505_v63 }
 0x296   :  { %1409 = vmatprep.subr.bf16.mxu1 %v1567_v12 }
 0x299   :  { %1410 = vmatpush3.bf16.msra.mxu1 %v1506_v0 }
 0x29a   :  { %1411 = vmatprep.subr.bf16.mxu1 %v1567_v12 }
 0x29d   :  { %1412 = vmatpush3.bf16.msra.mxu1 %v1507_v1 }
 0x29e   :  { %1413 = vmatprep.subr.bf16.mxu1 %v1567_v12 }
 0x2a1   :  { %1414 = vmatpush3.bf16.msra.mxu1 %v1508_v3 }
 0x2a2   :  { %1415 = vmatprep.subr.bf16.mxu1 %v1567_v12 }
 0x2a5   :  { %1416 = vmatpush3.bf16.msra.mxu1 %v1509_v5  ;;  %v875_v7 = vpop.f32.mrf.mxu0 }
 0x2a6   :  { %1417 = vmatprep.subr.bf16.mxu1 %v1567_v12 }
 0x2a7   :  { %v1401_v30 = vpop.f32.mrf.mxu0 }
 0x2a9   :  { %1418 = vmatpush3.bf16.msra.mxu1 %v1510_v8  ;;  %v878_v10 = vpop.f32.mrf.mxu0 }
 0x2ab   :  { %v1402_v13 = vpop.f32.mrf.mxu0 }
 0x2ac   :  { %1420 = vmatmul.mubr.bf16.vlgmr.msra.gmra.mxu1 %v882_v11 }
 0x34c   :  { %v769_v22 = vpop.f32.mrf.mxu1 }
 0x34d   :  { %v775_v23 = vadd.f32 %v769_v22, %v552_v21 }
 0x34e   :  { %v1381_v24 = vpop.f32.mrf.mxu1 }
 0x34f   :  { %v881_v36 = vadd.f32 %v875_v7, %v775_v23 }
 0x350   :  { %v772_v25 = vpop.f32.mrf.mxu1 }
 0x352   :  { %v1382_v26 = vpop.f32.mrf.mxu1 }
 0x36c   :  { %v988_v28 = vpop.f32.mrf.mxu1 }
 0x36d   :  { %v989_v29 = vadd.f32 %v1185_v27, %v988_v28 }
 0x36e   :  { %v1421_v12 = vpop.f32.mrf.mxu1 }
 0x36f   :  { %v994_v31 = vmax.f32 %v989_v29, 0.0 }
 0x370   :  { %v991_v33 = vpop.f32.mrf.mxu1 }
 0x371   :  { %v995_v34 = vpack.c.bf16 %v994_v31, %v994_v31 }
 0x372   :  { %v1422_v35 = vpop.f32.mrf.mxu1 }
 0x373   :  { %1440 = vmatmul.mubr.bf16.vlgmr.msra.gmra.mxu0 %v995_v34 }
 0x433   :  { %v1094_v37 = vpop.f32.mrf.mxu0 }
 0x434   :  { %v1100_v39 = vadd.f32 %v1094_v37, %v881_v36 }
 0x435   :  { %v1441_v40 = vpop.f32.mrf.mxu0 }
 0x436   :  { %v1108_v38 = vadd.f32 %v1202_v18, %v1100_v39 }
 0x437   :  { %v1097_v41 = vpop.f32.mrf.mxu0 }
 0x438   :  { %1109 = vst.msk [vmem:[#allocation5] sm:$0xff] %vm87_vm1, %v1108_v38 }
 0x439   :  { %v1442_v42 = vpop.f32.mrf.mxu0 }
 0x43a   :  { %1550 = shalt.err (!%p1547_p9)
}
 0x43b   :  { %1119 = dma.vmem_to_hbm [thread:$0]  %s1117_s22, 128, %s1891_s7, [#allocation4]  }
 0x43c   :  { %1561 = dma.done.wait [#allocation4], 128  }
 0x43d   :  { %1562 = vsyncadd [#allocation4], 4294967168 }
 0x43e   :  { %1123 = vsyncpa [#allocation3], 1 }
 0x43f   :  { %1124 = vsyncpa [#allocation4], 1 }

</bundles_post_ra>
